<compile_context>
chip_gen: v5e
topology: v5e:2x2
jax: 0.10.0
libtpu: 0.0.40
codegen_flags: <defaults>
</compile_context>

<pallas_src>
import jax
import jax.numpy as jnp
from jax.experimental import pallas as pl
from jax.experimental.pallas import tpu as pltpu


def _round_up(x, m):
    return ((x + m - 1) // m) * m


def _round_down(x, m):
    return (x // m) * m


def _sublane_multiple(dtype):
    # 8 rows for 4-byte, 16 for 2-byte, 32 for 1-byte dtypes.
    return max(8, 32 // jnp.dtype(dtype).itemsize)


def _pick_tile(padded_dim, unit, max_tile):
    """Largest multiple of `unit` that divides `padded_dim` and is <= max_tile."""
    best = unit
    t = unit
    limit = min(padded_dim, max_tile)
    while t <= limit:
        if padded_dim % t == 0:
            best = t
        t += unit
    return best


def _make_dense_kernel(tk, x_resident, acc_in_out):
    """Build the kernel body.

    x_ref : (tm, Kp) if x_resident else (tm, tk)   activation (VMEM)
    w_ref : (tk, tn)                               K-major weight tile (VMEM)
    b_ref : (1, tn)                                bias tile, resident over K
    o_ref : (tm, tn)                               output tile, resident over K
    scratch[0] : (tm, tn) f32 accumulator, only when acc_in_out is False
    """

    def kernel(x_ref, w_ref, b_ref, o_ref, *scratch):
        k = pl.program_id(2)
        acc_ref = o_ref if acc_in_out else scratch[0]

        @pl.when(k == 0)
        def _init():
            acc_ref[...] = jnp.zeros_like(acc_ref)

        if x_resident:
            # x is fully K-resident; slice out the current 128-aligned K chunk.
            x_tile = x_ref[:, pl.ds(pl.multiple_of(k * tk, 128), tk)]
        else:
            x_tile = x_ref[...]

        # Native (M,K)x(K,N) MXU path (weight is K-major; no RHS transpose).
        acc_ref[...] += jnp.dot(x_tile, w_ref[...],
                                preferred_element_type=jnp.float32)

        @pl.when(k == pl.num_programs(2) - 1)
        def _finish():
            if acc_in_out:
                o_ref[...] += b_ref[...].astype(jnp.float32)
            else:
                o_ref[...] = (acc_ref[...]
                              + b_ref[...].astype(jnp.float32)).astype(o_ref.dtype)

    return kernel


def prepare_dense_params(weight, bias):
    """One-time (init-time) parameter prep — NOT in the per-call hot path.

    Folds the PyTorch (D_out, D_in) -> K-major (Kp, Np) transpose into the
    padding copy, and pads the bias to a lane-dense (1, Np) row.
    """
    D_out, D_in = weight.shape
    Kp = _round_up(D_in, 128)
    Np = _round_up(D_out, 128)

    if (Kp, Np) == (D_in, D_out):
        w_kmajor = weight.T                      # single transpose, paid once
    else:
        w_kmajor = jnp.zeros((Kp, Np), weight.dtype).at[:D_in, :D_out].set(weight.T)

    bias_row = jnp.zeros((1, Np), bias.dtype).at[0, :D_out].set(bias)

    return {"w_kmajor": w_kmajor, "bias_row": bias_row,
            "d_in": D_in, "d_out": D_out}


def dense_forward(x, params, *, tm_max=256, tn_max=512, tk_max=1024,
                  x_resident_bytes=4 * 1024 * 1024):
    """x: (B, D_in). Returns (B, D_out, 1, 1), matching `dense(x)[..., None, None]`."""
    w_kmajor = params["w_kmajor"]                # (Kp, Np)
    bias_row = params["bias_row"]                # (1, Np)
    D_in, D_out = params["d_in"], params["d_out"]
    B = x.shape[0]
    assert x.shape[1] == D_in
    Kp, Np = w_kmajor.shape

    # --- tile selection (tiles always divide the padded dims) -----------------
    sub = _sublane_multiple(x.dtype)             # dtype-aware sublane rounding
    Bp = _round_up(B, sub)
    tm = _pick_tile(Bp, sub, tm_max)
    tk = _pick_tile(Kp, 128, tk_max)
    # Keep >= 2 N grid steps when Np >= 256 so both v7x TensorCores get work.
    tn_cap = tn_max
    if Np >= 256:
        tn_cap = min(tn_max, max(128, _round_down(Np // 2, 128)))
    tn = _pick_tile(Np, 128, tn_cap)

    # --- pad x only when needed (no copy for tile-aligned shapes) -------------
    if (Bp, Kp) == (B, D_in):
        xp = x
    else:
        xp = jnp.zeros((Bp, Kp), x.dtype).at[:B, :D_in].set(x)

    grid = (Bp // tm, Np // tn, Kp // tk)
    out_dtype = x.dtype
    acc_in_out = jnp.dtype(out_dtype) == jnp.dtype(jnp.float32)
    x_itemsize = jnp.dtype(x.dtype).itemsize
    x_resident = (tm * Kp * x_itemsize) <= x_resident_bytes

    if x_resident:
        # Same block index for all (j, k) -> x stays resident in VMEM; only the
        # weight tiles are streamed from HBM.
        x_spec = pl.BlockSpec((tm, Kp), lambda i, j, k: (i, 0))
    else:
        x_spec = pl.BlockSpec((tm, tk), lambda i, j, k: (i, k))

    in_specs = [
        x_spec,
        pl.BlockSpec((tk, tn), lambda i, j, k: (k, j)),   # K-major weight tile
        pl.BlockSpec((1, tn), lambda i, j, k: (0, j)),    # bias, resident over K
    ]
    out_spec = pl.BlockSpec((tm, tn), lambda i, j, k: (i, j))
    scratch_shapes = [] if acc_in_out else [pltpu.VMEM((tm, tn), jnp.float32)]

    kernel = _make_dense_kernel(tk, x_resident, acc_in_out)

    gm, gn, _ = grid
    w_itemsize = jnp.dtype(w_kmajor.dtype).itemsize
    o_itemsize = jnp.dtype(out_dtype).itemsize
    b_itemsize = jnp.dtype(bias_row.dtype).itemsize
    bytes_accessed = int(
        (1 if x_resident else gn) * Bp * Kp * x_itemsize   # x (re-read per N tile if tiled)
        + gm * Kp * Np * w_itemsize                         # weight re-read per M tile
        + Bp * Np * o_itemsize                              # output written once
        + gm * gn * tn * b_itemsize                         # bias (tiny)
    )

    out = pl.pallas_call(
        kernel,
        out_shape=jax.ShapeDtypeStruct((Bp, Np), out_dtype),
        grid_spec=pltpu.PrefetchScalarGridSpec(
            num_scalar_prefetch=0,
            grid=grid,
            in_specs=in_specs,
            out_specs=out_spec,
            scratch_shapes=scratch_shapes,
        ),
        compiler_params=pltpu.CompilerParams(
            dimension_semantics=("parallel", "parallel", "arbitrary"),
            # Double-buffered footprint here is < ~10 MiB; 48 MiB leaves
            # headroom on v7x (64 MiB physical) and is trivially fine on
            # v5e/v6e (128 MiB).
            vmem_limit_bytes=48 * 1024 * 1024,
        ),
        cost_estimate=pl.CostEstimate(
            flops=2 * Bp * Kp * Np,
            transcendentals=0,
            bytes_accessed=bytes_accessed,
        ),
    )(xp, w_kmajor, bias_row)

    # Un-pad, then the `[..., None, None]` reshape glue outside the kernel.
    return out[:B, :D_out][:, :, None, None]


def _torch_linear_init(key, d_in, d_out, dtype=jnp.float32):
    """PyTorch nn.Linear-style init: U(-1/sqrt(d_in), 1/sqrt(d_in))."""
    kw, kb = jax.random.split(key)
    bound = 1.0 / (d_in ** 0.5)
    weight = jax.random.uniform(kw, (d_out, d_in), dtype, -bound, bound)
    bias = jax.random.uniform(kb, (d_out,), dtype, -bound, bound)
    return weight, bias


if __name__ == "__main__":
    key = jax.random.PRNGKey(0)

    # --- Case 1: small shape implied by the module (B=2, D_in=32, D_out=16) ---
    B, D_in, D_out = 2, 32, 16
    k1, k2, key = jax.random.split(key, 3)
    weight, bias = _torch_linear_init(k1, D_in, D_out)
    x = jax.random.normal(k2, (B, D_in), jnp.float32)

    params = prepare_dense_params(weight, bias)           # init-time (hoisted)
    y = jax.block_until_ready(dense_forward(x, params))
    y_ref = (x @ weight.T + bias)[:, :, None, None]
    assert y.shape == (B, D_out, 1, 1), y.shape
    assert jnp.allclose(y, y_ref, atol=1e-5, rtol=1e-5)

    # --- Case 2: non-aligned shape exercising the padded / multi-N-tile path ---
    B2, D_in2, D_out2 = 8, 640, 200
    k3, k4, key = jax.random.split(key, 3)
    weight2, bias2 = _torch_linear_init(k3, D_in2, D_out2)
    x2 = jax.random.normal(k4, (B2, D_in2), jnp.float32)

    params2 = prepare_dense_params(weight2, bias2)
    y2 = jax.block_until_ready(dense_forward(x2, params2))
    y2_ref = (x2 @ weight2.T + bias2)[:, :, None, None]
    assert y2.shape == (B2, D_out2, 1, 1), y2.shape
    assert jnp.allclose(y2, y2_ref, atol=1e-4, rtol=1e-4)

    print("KERNEL_OK")
</pallas_src>

<mosaic_0001>
module attributes {stable_mosaic.version = 11 : i64} {
  func.func @kernel(%arg0: i32, %arg1: i32, %arg2: i32, %arg3: memref<8x128xf32, #tpu.memory_space<vmem>>, %arg4: memref<128x128xf32, #tpu.memory_space<vmem>>, %arg5: memref<1x128xf32, #tpu.memory_space<vmem>>, %arg6: memref<8x128xf32, #tpu.memory_space<vmem>>) attributes {dimension_semantics = [#tpu.dimension_semantics<parallel>, #tpu.dimension_semantics<parallel>, #tpu.dimension_semantics<arbitrary>], iteration_bounds = array<i64: 1, 1, 1>, scalar_prefetch = 0 : i64, scratch_operands = 0 : i64, tpu.core_type = #tpu.core_type<tc>, window_params = [{transform_indices = @transform_0, window_bounds = array<i64: 8, 128>}, {transform_indices = @transform_1, window_bounds = array<i64: 128, 128>}, {transform_indices = @transform_2, window_bounds = array<i64: 1, 128>}, {transform_indices = @transform_3, window_bounds = array<i64: 8, 128>}]} {
    %c0_i32 = arith.constant 0 : i32
    %0 = arith.cmpi eq, %arg2, %c0_i32 : i32
    %1 = arith.extui %0 : i1 to i32
    %c0_i32_0 = arith.constant 0 : i32
    %2 = arith.cmpi ne, %1, %c0_i32_0 : i32
    scf.if %2 {
      %cst_9 = arith.constant 0.000000e+00 : f32
      %15 = vector.broadcast %cst_9 : f32 to vector<8x128xf32>
      %c0_10 = arith.constant 0 : index
      %c0_11 = arith.constant 0 : index
      %16 = vector.load %arg6[%c0_10, %c0_11] : memref<8x128xf32, #tpu.memory_space<vmem>>, vector<8x128xf32>
      tpu.vector_store %arg6[%c0_10, %c0_11], %15 {strides = array<i32>} : memref<8x128xf32, #tpu.memory_space<vmem>>, vector<8x128xf32>,
    } else {
    }
    %c128_i32 = arith.constant 128 : i32
    %3 = arith.muli %arg2, %c128_i32 : i32
    %4 = tpu.assume_multiple %3, 128 : i32
    %c0 = arith.constant 0 : index
    %5 = arith.index_cast %4 : i32 to index
    %6 = vector.load %arg3[%c0, %5] : memref<8x128xf32, #tpu.memory_space<vmem>>, vector<8x128xf32>
    %c0_1 = arith.constant 0 : index
    %c0_2 = arith.constant 0 : index
    %7 = vector.load %arg6[%c0_1, %c0_2] : memref<8x128xf32, #tpu.memory_space<vmem>>, vector<8x128xf32>
    %c0_3 = arith.constant 0 : index
    %c0_4 = arith.constant 0 : index
    %8 = vector.load %arg4[%c0_3, %c0_4] : memref<128x128xf32, #tpu.memory_space<vmem>>, vector<128x128xf32>
    %cst = arith.constant dense<0.000000e+00> : vector<8x128xf32>
    %9 = tpu.matmul %6, %8, %cst {dimension_numbers = #tpu.dot_dimension_numbers<[1], [0], [0], [1], [0, 0, 1, 1], [], []>} : vector<8x128xf32>, vector<128x128xf32>, vector<8x128xf32> -> vector<8x128xf32>
    %10 = arith.addf %7, %9 : vector<8x128xf32>
    %c0_5 = arith.constant 0 : index
    %c0_6 = arith.constant 0 : index
    %11 = vector.load %arg6[%c0_5, %c0_6] : memref<8x128xf32, #tpu.memory_space<vmem>>, vector<8x128xf32>
    tpu.vector_store %arg6[%c0_5, %c0_6], %10 {strides = array<i32>} : memref<8x128xf32, #tpu.memory_space<vmem>>, vector<8x128xf32>,
    %c0_i32_7 = arith.constant 0 : i32
    %12 = arith.cmpi eq, %arg2, %c0_i32_7 : i32
    %13 = arith.extui %12 : i1 to i32
    %c0_i32_8 = arith.constant 0 : i32
    %14 = arith.cmpi ne, %13, %c0_i32_8 : i32
    scf.if %14 {
      %c0_9 = arith.constant 0 : index
      %c0_10 = arith.constant 0 : index
      %15 = vector.load %arg6[%c0_9, %c0_10] : memref<8x128xf32, #tpu.memory_space<vmem>>, vector<8x128xf32>
      %c0_11 = arith.constant 0 : index
      %c0_12 = arith.constant 0 : index
      %16 = vector.load %arg5[%c0_11, %c0_12] : memref<1x128xf32, #tpu.memory_space<vmem>>, vector<1x128xf32>
      %17 = vector.broadcast %16 : vector<1x128xf32> to vector<8x128xf32>
      %18 = arith.addf %15, %17 : vector<8x128xf32>
      %c0_13 = arith.constant 0 : index
      %c0_14 = arith.constant 0 : index
      %19 = vector.load %arg6[%c0_13, %c0_14] : memref<8x128xf32, #tpu.memory_space<vmem>>, vector<8x128xf32>
      tpu.vector_store %arg6[%c0_13, %c0_14], %18 {strides = array<i32>} : memref<8x128xf32, #tpu.memory_space<vmem>>, vector<8x128xf32>,
    } else {
    }
    return
  }
  func.func @transform_0(%arg0: i32, %arg1: i32, %arg2: i32) -> (i32, i32) {
    %c0_i32 = arith.constant 0 : i32
    %c0_i32_0 = arith.constant 0 : i32
    return %arg0, %c0_i32 : i32, i32
  }
  func.func @transform_1(%arg0: i32, %arg1: i32, %arg2: i32) -> (i32, i32) {
    %c0_i32 = arith.constant 0 : i32
    return %arg2, %arg1 : i32, i32
  }
  func.func @transform_2(%arg0: i32, %arg1: i32, %arg2: i32) -> (i32, i32) {
    %c0_i32 = arith.constant 0 : i32
    %c0_i32_0 = arith.constant 0 : i32
    return %c0_i32, %arg1 : i32, i32
  }
  func.func @transform_3(%arg0: i32, %arg1: i32, %arg2: i32) -> (i32, i32) {
    %c0_i32 = arith.constant 0 : i32
    return %arg0, %arg1 : i32, i32
  }
}

</mosaic_0001>

<bundles_post_ra>
// kernel: tpu_custom_call.1
= control target key start
LH: loop header
LB: loop body
LE: loop exit
PB: predicated region body
PF: predicated region fallthrough
CT: control target
= control target key end

     0   :  { %8 = vsyncpa [#allocation3], 0  ;;  %s245_s0 = inlined_call_operand.hbm [shape: f32[8,128], index: 0, kind: input, shape index: {}]   ;;  %s246_s1 = inlined_call_operand.hbm [shape: f32[128,128], index: 1, kind: input, shape index: {}]   ;;  %s247_s2 = inlined_call_operand.vmem [shape: f32[1,128], index: 2, kind: input, shape index: {}]   ;;  %s248_s3 = inlined_call_operand.hbm [shape: f32[8,128], index: 3, kind: output, shape index: {}]  }
   0x1   :  { %9 = vsyncpa [#allocation6], 0 }
   0x2   :  { %10 = vsyncpa [#allocation4], 0  ;;  %s16_s14 = sshll.u32 %s245_s0, 4  ;;  %s208_s15 = smov [#allocation2]   ;;  %s17_s14 = int_to_ptr.hbm [resolvable:$true] %s16_s14 }
   0x3   :  { %s18_s16 = sshll.u32 %s208_s15, 4  ;;  %s26_s19 = sshll.u32 %s246_s1, 4  ;;  %s19_s16 = int_to_ptr.vmem [resolvable:$true] %s18_s16  ;;  %s27_s19 = int_to_ptr.hbm [resolvable:$true] %s26_s19 }
   0x4   :  { %21 = dma.hbm_to_vmem [thread:$0]  %s17_s14, 128, %s19_s16, [#allocation3]  }
   0x5   :  { %s209_s20 = smov [#allocation5]   ;;  %s210_s22 = smov 128  }
   0x6   :  { %s28_s21 = sshll.u32 %s209_s20, 4  ;;  %s211_s23 = smov 8   ;;  %s29_s21 = int_to_ptr.vmem [resolvable:$true] %s28_s21 }
   0x7   :  { %34 = dma.hbm_to_vmem [thread:$0]  %s27_s19, 2048, %s29_s21, [#allocation6], %s210_s22, %s210_s22, %s211_s23  }
   0x8   :  { %202 = dma.done.wait [#allocation3], 128  }
   0x9   :  { %203 = vsyncadd [#allocation3], 4294967168 }
   0xa   :  { %204 = dma.done.wait [#allocation6], 2048  }
   0xb   :  { %205 = vsyncadd [#allocation6], 4294965248  ;;  %v71_v0 = vld [vmem:[#allocation5 + $0x78] sm:$0xff]  ;;  %v70_v1 = vld [vmem:[#allocation5 + $0x70] sm:$0xff]  ;;  %s212_s24 = smov [#allocation7]   ;;  %s111_s28 = sshll.u32 %s248_s3, 4  ;;  %s112_s28 = int_to_ptr.hbm [resolvable:$true] %s111_s28 }
   0xc   :  { %72 = vmatpush.msra.mxu0 %v71_v0  ;;  %v69_v2 = vld [vmem:[#allocation5 + $0x68] sm:$0xff]  ;;  %v68_v3 = vld [vmem:[#allocation5 + $0x60] sm:$0xff]  ;;  %v67_v4 = vld [vmem:[#allocation5 + $0x58] sm:$0xff]  ;;  %s109_s25 = sshll.u32 %s212_s24, 4  ;;  %s110_s25 = int_to_ptr.vmem [resolvable:$true] %s109_s25 }
   0xd   :  { %v66_v5 = vld [vmem:[#allocation5 + $0x50] sm:$0xff]  ;;  %v65_v6 = vld [vmem:[#allocation5 + $0x48] sm:$0xff]  ;;  %v64_v7 = vld [vmem:[#allocation5 + $0x40] sm:$0xff] }
   0xe   :  { %73 = vmatpush.msra.mxu0 %v70_v1  ;;  %v63_v8 = vld [vmem:[#allocation5 + $0x38] sm:$0xff]  ;;  %v62_v9 = vld [vmem:[#allocation5 + $0x30] sm:$0xff]  ;;  %v61_v10 = vld [vmem:[#allocation5 + $0x28] sm:$0xff] }
   0xf   :  { %v60_v11 = vld [vmem:[#allocation5 + $0x20] sm:$0xff]  ;;  %v59_v12 = vld [vmem:[#allocation5 + $0x18] sm:$0xff]  ;;  %v58_v13 = vld [vmem:[#allocation5 + $0x10] sm:$0xff] }
  0x10   :  { %74 = vmatpush.msra.mxu0 %v69_v2  ;;  %v57_v14 = vld [vmem:[#allocation5 + $0x8] sm:$0xff]  ;;  %v56_v15 = vld [vmem:[#allocation5] sm:$0xff]  ;;  %v54_v16 = vld [vmem:[#allocation2] sm:$0xff] }
  0x11   :  { %v129_v17 = vld [vmem:[%s247_s2] ss:$0 sm:$0xff] }
  0x12   :  { %75 = vmatpush.msra.mxu0 %v68_v3 }
  0x14   :  { %76 = vmatpush.msra.mxu0 %v67_v4 }
  0x16   :  { %77 = vmatpush.msra.mxu0 %v66_v5 }
  0x18   :  { %78 = vmatpush.msra.mxu0 %v65_v6 }
  0x1a   :  { %79 = vmatpush.msra.mxu0 %v64_v7 }
  0x1c   :  { %80 = vmatpush.msra.mxu0 %v63_v8 }
  0x1e   :  { %81 = vmatpush.msra.mxu0 %v62_v9 }
  0x20   :  { %82 = vmatpush.msra.mxu0 %v61_v10 }
  0x22   :  { %83 = vmatpush.msra.mxu0 %v60_v11 }
  0x24   :  { %84 = vmatpush.msra.mxu0 %v59_v12 }
  0x26   :  { %85 = vmatpush.msra.mxu0 %v58_v13 }
  0x28   :  { %86 = vmatpush.msra.mxu0 %v57_v14 }
  0x2a   :  { %87 = vmatpush.msra.mxu0 %v56_v15 }
  0x2b   :  { %88 = vmatmul.f32.vlgmr.msra.gmra.mxu0 %v54_v16 }
  0xa8   :  { %v89_v18 = vpop.f32.mrf.mxu0 }
  0xa9   :  { %v102_v19 = vadd.f32 %v129_v17, %v89_v18 }
  0xab   :  { %103 = vst [vmem:[#allocation7] sm:$0xff] %v102_v19 }
  0xac   :  { %114 = dma.vmem_to_hbm [thread:$0]  %s110_s25, 128, %s112_s28, [#allocation4]  }
  0xad   :  { %206 = dma.done.wait [#allocation4], 128  }
  0xae   :  { %207 = vsyncadd [#allocation4], 4294967168 }
  0xaf   :  { %119 = vsyncpa [#allocation3], 1 }
  0xb0   :  { %120 = vsyncpa [#allocation6], 1 }
  0xb1   :  { %121 = vsyncpa [#allocation4], 1 }

</bundles_post_ra>
